<compile_context>
chip_gen: v7x
topology: tpu7x:2x2x1
jax: 0.10.0
libtpu: 0.0.40
codegen_flags: <defaults>
</compile_context>

<pallas_src>
import jax
import jax.numpy as jnp
from jax.experimental import pallas as pl
from jax.experimental.pallas import tpu as pltpu


def _cross_modal_attn_kernel(q_ref, kv_ref,
                             wq_ref, bq_ref,
                             wkv_ref, bkv_ref,
                             o_ref):
    bt, lq, dq = q_ref.shape
    _, lk, dkv = kv_ref.shape
    hp = wq_ref.shape[1]                 # lane-padded hidden (multiple of 128)

    # ---- Projections on flattened (Bt*L, D) slabs (bigger MXU M dim). ----
    # bf16 operands, f32 accumulation; weights arrive pre-cast to bf16.
    q2 = q_ref[...].reshape(bt * lq, dq).astype(jnp.bfloat16)
    kv2 = kv_ref[...].reshape(bt * lk, dkv).astype(jnp.bfloat16)

    Q = (jnp.dot(q2, wq_ref[...], preferred_element_type=jnp.float32)
         + bq_ref[...]).reshape(bt, lq, hp)                   # (Bt, Lq, Hp) f32

    KV = (jnp.dot(kv2, wkv_ref[...], preferred_element_type=jnp.float32)
          + bkv_ref[...])                                     # (Bt*Lk, 2Hp) f32
    # hp is a multiple of 128, so the V half starts at a lane-aligned offset
    # -> no cross-lane relayout for these slices.
    K = KV[:, :hp].reshape(bt, lk, hp)
    V = KV[:, hp:].reshape(bt, lk, hp)

    # ---- Attention scores: contract last dims, no explicit K.T. ----
    # (The PyTorch module applies NO 1/sqrt(d) scaling -> neither do we.)
    scores = jnp.einsum("bqd,bkd->bqk",
                        Q.astype(jnp.bfloat16), K.astype(jnp.bfloat16),
                        preferred_element_type=jnp.float32)   # (Bt, Lq, Lk) f32

    # ---- Numerically-stable softmax, fully in f32 (exact reciprocal). ----
    m = jnp.max(scores, axis=-1, keepdims=True)
    e = jnp.exp(scores - m)
    denom = jnp.sum(e, axis=-1, keepdims=True)
    probs = e * pl.reciprocal(denom, approx=False)            # full precision

    # ---- Weighted sum of values (bf16 operands, f32 accumulation). ----
    out = jnp.einsum("bqk,bkd->bqd",
                     probs.astype(jnp.bfloat16), V.astype(jnp.bfloat16),
                     preferred_element_type=jnp.float32)
    o_ref[...] = out.astype(o_ref.dtype)


def _tpu_policy():
    """Generation-aware (budget_bytes, vmem_limit_bytes, prefer_even_grid)."""
    budget = 20 * 1024 * 1024          # conservative default (safe on v7x)
    vmem_limit = 32 * 1024 * 1024
    prefer_even_grid = False
    try:
        cap = int(pltpu.get_tpu_info().vmem_capacity_bytes)
        # v5e/v6e (128 MiB) -> ~56 MiB budget, 64 MiB limit.
        # v7x (64 MiB)      -> ~24 MiB budget, 32 MiB limit.
        budget = max(budget, min(cap // 2 - 8 * 1024 * 1024, 96 * 1024 * 1024))
        vmem_limit = min(cap, max(vmem_limit, budget + 8 * 1024 * 1024))
    except Exception:
        pass
    try:
        kind = jax.devices()[0].device_kind.lower()
        # Only v7x has 2 TensorCores per chip -> prefer an even-length
        # "parallel" grid there; on v5e/v6e splitting just adds per-step cost.
        prefer_even_grid = ("v7" in kind) or ("7x" in kind)
    except Exception:
        pass
    return budget, vmem_limit, prefer_even_grid


def _pick_batch_tile(B, per_batch_bytes, fixed_bytes, *, vmem_budget,
                     prefer_even_grid):
    """Largest divisor-of-B batch tile whose footprint fits the VMEM budget."""
    divisors = [d for d in range(1, B + 1) if B % d == 0]
    if prefer_even_grid:
        even = sorted((d for d in divisors if (B // d) % 2 == 0), reverse=True)
        rest = sorted((d for d in divisors if (B // d) % 2 != 0), reverse=True)
        candidates = even + rest
    else:
        candidates = sorted(divisors, reverse=True)   # whole batch first
    for bt in candidates:
        if fixed_bytes + bt * per_batch_bytes <= vmem_budget:
            return bt
    return 1


def cross_modal_attention(query_modality, kv_modality,
                          wq, bq, wk, bk, wv, bv):
    """query_modality: [B, Lq, Dq], kv_modality: [B, Lk, Dkv] -> [B, Lq, H]."""
    B, Lq, Dq = query_modality.shape
    _, Lk, Dkv = kv_modality.shape
    H = wq.shape[1]

    # ---- Lane-dense padding of the hidden dim (exact: zero columns). ----
    Hp = ((H + 127) // 128) * 128
    pad = Hp - H
    _pw = (lambda w: jnp.pad(w, ((0, 0), (0, pad)))) if pad else (lambda w: w)
    _pb = (lambda b: jnp.pad(b, ((0, pad),))) if pad else (lambda b: b)

    wq_p = _pw(wq).astype(jnp.bfloat16)                            # (Dq, Hp)
    wkv_p = jnp.concatenate([_pw(wk), _pw(wv)], axis=1).astype(jnp.bfloat16)
    bq_p = _pb(bq).reshape(1, Hp).astype(jnp.float32)
    bkv_p = jnp.concatenate([_pb(bk), _pb(bv)], axis=0
                            ).reshape(1, 2 * Hp).astype(jnp.float32)

    budget, vmem_limit, prefer_even_grid = _tpu_policy()

    # ---- VMEM footprint model: tiles + in-kernel intermediates + headroom.
    f32, bf16 = 4, 2
    per_batch_bytes = int(1.25 * (
        2 * (Lq * Dq + Lk * Dkv) * f32                 # double-buffered inputs
        + 2 * Lq * Hp * f32                            # double-buffered output
        + (2 * Lq * Hp + 4 * Lk * Hp + 3 * Lq * Lk) * f32   # Q,out,KV,K,V,scores,e,probs
        + (Lq * Hp + 2 * Lk * Hp + Lq * Lk) * bf16))        # bf16 casts
    weight_bytes = (Dq * Hp + 2 * Dkv * Hp) * bf16 + 3 * Hp * f32

    def build(single_buffer_weights):
        wkw = ({"pipeline_mode": pl.Buffered(1)}
               if single_buffer_weights else {})
        n_wbuf = 1 if single_buffer_weights else 2
        bt = _pick_batch_tile(B, per_batch_bytes, n_wbuf * weight_bytes,
                              vmem_budget=budget,
                              prefer_even_grid=prefer_even_grid)
        grid_spec = pltpu.PrefetchScalarGridSpec(
            num_scalar_prefetch=0,
            grid=(B // bt,),
            in_specs=[
                pl.BlockSpec((bt, Lq, Dq), lambda b: (b, 0, 0)),   # query tile
                pl.BlockSpec((bt, Lk, Dkv), lambda b: (b, 0, 0)),  # kv tile
                pl.BlockSpec((Dq, Hp), lambda b: (0, 0), **wkw),   # Wq (bf16)
                pl.BlockSpec((1, Hp), lambda b: (0, 0), **wkw),    # bq
                pl.BlockSpec((Dkv, 2 * Hp), lambda b: (0, 0), **wkw),  # Wk||Wv
                pl.BlockSpec((1, 2 * Hp), lambda b: (0, 0), **wkw),    # bk||bv
            ],
            out_specs=pl.BlockSpec((bt, Lq, Hp), lambda b: (b, 0, 0)),
        )
        return pl.pallas_call(
            _cross_modal_attn_kernel,
            out_shape=jax.ShapeDtypeStruct((B, Lq, Hp), jnp.float32),
            grid_spec=grid_spec,
            compiler_params=pltpu.CompilerParams(
                dimension_semantics=("parallel",),
                vmem_limit_bytes=vmem_limit,
            ),
        )

    # NOTE: Lq/Lk that are not multiples of 8 are still correct (sublane
    # padding is handled by Mosaic) but may cost an extra relayout per step.
    args = (query_modality, kv_modality, wq_p, bq_p, wkv_p, bkv_p)
    try:
        out = jax.block_until_ready(build(True)(*args))
    except Exception:
        # Fallback if single-buffering via pl.Buffered(1) is unsupported.
        out = jax.block_until_ready(build(False)(*args))

    return out[..., :H]     # strip lane padding


def _reference(query_modality, kv_modality, wq, bq, wk, bk, wv, bv):
    Q = query_modality @ wq + bq
    K = kv_modality @ wk + bk
    V = kv_modality @ wv + bv
    scores = jnp.einsum("bqh,bkh->bqk", Q, K)
    probs = jax.nn.softmax(scores, axis=-1)
    return jnp.einsum("bqk,bkh->bqh", probs, V)


if __name__ == "__main__":
    # Small deterministic problem matching the module's forward.
    B, Lq, Lk = 2, 8, 8
    query_dim, kv_dim, hidden_dim = 16, 12, 32

    key = jax.random.PRNGKey(0)
    k_q, k_kv, k_wq, k_bq, k_wk, k_bk, k_wv, k_bv = jax.random.split(key, 8)

    query_modality = jax.random.normal(k_q, (B, Lq, query_dim), dtype=jnp.float32)
    kv_modality = jax.random.normal(k_kv, (B, Lk, kv_dim), dtype=jnp.float32)

    # Deterministic parameter init mimicking nn.Linear (uniform +-1/sqrt(in)).
    def _init_linear(kw, kb, in_dim, out_dim):
        bound = 1.0 / jnp.sqrt(in_dim)
        w = jax.random.uniform(kw, (in_dim, out_dim), jnp.float32, -bound, bound)
        b = jax.random.uniform(kb, (out_dim,), jnp.float32, -bound, bound)
        return w, b

    wq, bq = _init_linear(k_wq, k_bq, query_dim, hidden_dim)
    wk, bk = _init_linear(k_wk, k_bk, kv_dim, hidden_dim)
    wv, bv = _init_linear(k_wv, k_bv, kv_dim, hidden_dim)

    out = cross_modal_attention(query_modality, kv_modality,
                                wq, bq, wk, bk, wv, bv)
    out = jax.block_until_ready(out)

    ref = _reference(query_modality, kv_modality, wq, bq, wk, bk, wv, bv)
    assert out.shape == (B, Lq, hidden_dim)
    # Tolerance reflects bf16 MXU operand rounding (f32 accumulation, f32
    # softmax) propagated through the softmax; typical max abs error at these
    # magnitudes is ~1e-2, worst case a few e-2.  The reference on TPU also
    # runs matmuls at default (bf16-ish) precision.
    assert jnp.allclose(out, ref, atol=5e-2, rtol=5e-2)

    print("KERNEL_OK")
</pallas_src>

<mosaic_0001>
module attributes {stable_mosaic.version = 11 : i64} {
  func.func @_cross_modal_attn_kernel(%arg0: i32, %arg1: memref<2x8x16xf32, #tpu.memory_space<vmem>>, %arg2: memref<2x8x12xf32, #tpu.memory_space<vmem>>, %arg3: memref<16x128xbf16, #tpu.memory_space<vmem>>, %arg4: memref<1x128xf32, #tpu.memory_space<vmem>>, %arg5: memref<12x256xbf16, #tpu.memory_space<vmem>>, %arg6: memref<1x256xf32, #tpu.memory_space<vmem>>, %arg7: memref<2x8x128xf32, #tpu.memory_space<vmem>>) attributes {dimension_semantics = [#tpu.dimension_semantics<parallel>], iteration_bounds = array<i64: 1>, scalar_prefetch = 0 : i64, scratch_operands = 0 : i64, tpu.core_type = #tpu.core_type<tc>, window_params = [{transform_indices = @transform_0, window_bounds = array<i64: 2, 8, 16>}, {transform_indices = @transform_1, window_bounds = array<i64: 2, 8, 12>}, {pipeline_mode = #tpu.pipeline_mode<synchronous>, transform_indices = @transform_2, window_bounds = array<i64: 16, 128>}, {pipeline_mode = #tpu.pipeline_mode<synchronous>, transform_indices = @transform_3, window_bounds = array<i64: 1, 128>}, {pipeline_mode = #tpu.pipeline_mode<synchronous>, transform_indices = @transform_4, window_bounds = array<i64: 12, 256>}, {pipeline_mode = #tpu.pipeline_mode<synchronous>, transform_indices = @transform_5, window_bounds = array<i64: 1, 256>}, {transform_indices = @transform_6, window_bounds = array<i64: 2, 8, 128>}]} {
    %c0 = arith.constant 0 : index
    %c0_0 = arith.constant 0 : index
    %c0_1 = arith.constant 0 : index
    %0 = vector.load %arg1[%c0, %c0_0, %c0_1] : memref<2x8x16xf32, #tpu.memory_space<vmem>>, vector<2x8x16xf32>
    %1 = vector.shape_cast %0 : vector<2x8x16xf32> to vector<16x16xf32>
    %2 = arith.truncf %1 : vector<16x16xf32> to vector<16x16xbf16>
    %c0_2 = arith.constant 0 : index
    %c0_3 = arith.constant 0 : index
    %c0_4 = arith.constant 0 : index
    %3 = vector.load %arg2[%c0_2, %c0_3, %c0_4] : memref<2x8x12xf32, #tpu.memory_space<vmem>>, vector<2x8x12xf32>
    %4 = vector.shape_cast %3 : vector<2x8x12xf32> to vector<16x12xf32>
    %5 = arith.truncf %4 : vector<16x12xf32> to vector<16x12xbf16>
    %c0_5 = arith.constant 0 : index
    %c0_6 = arith.constant 0 : index
    %6 = vector.load %arg3[%c0_5, %c0_6] : memref<16x128xbf16, #tpu.memory_space<vmem>>, vector<16x128xbf16>
    %cst = arith.constant dense<0.000000e+00> : vector<16x128xf32>
    %7 = tpu.matmul %2, %6, %cst {dimension_numbers = #tpu.dot_dimension_numbers<[1], [0], [0], [1], [0, 0, 1, 1], [], []>} : vector<16x16xbf16>, vector<16x128xbf16>, vector<16x128xf32> -> vector<16x128xf32>
    %c0_7 = arith.constant 0 : index
    %c0_8 = arith.constant 0 : index
    %8 = vector.load %arg4[%c0_7, %c0_8] : memref<1x128xf32, #tpu.memory_space<vmem>>, vector<1x128xf32>
    %9 = vector.broadcast %8 : vector<1x128xf32> to vector<16x128xf32>
    %10 = arith.addf %7, %9 : vector<16x128xf32>
    %11 = vector.shape_cast %10 : vector<16x128xf32> to vector<2x8x128xf32>
    %c0_9 = arith.constant 0 : index
    %c0_10 = arith.constant 0 : index
    %12 = vector.load %arg5[%c0_9, %c0_10] : memref<12x256xbf16, #tpu.memory_space<vmem>>, vector<12x256xbf16>
    %cst_11 = arith.constant dense<0.000000e+00> : vector<16x256xf32>
    %13 = tpu.matmul %5, %12, %cst_11 {dimension_numbers = #tpu.dot_dimension_numbers<[1], [0], [0], [1], [0, 0, 1, 1], [], []>} : vector<16x12xbf16>, vector<12x256xbf16>, vector<16x256xf32> -> vector<16x256xf32>
    %c0_12 = arith.constant 0 : index
    %c0_13 = arith.constant 0 : index
    %14 = vector.load %arg6[%c0_12, %c0_13] : memref<1x256xf32, #tpu.memory_space<vmem>>, vector<1x256xf32>
    %15 = vector.broadcast %14 : vector<1x256xf32> to vector<16x256xf32>
    %16 = arith.addf %13, %15 : vector<16x256xf32>
    %17 = vector.extract_strided_slice %16 {offsets = [0, 0], sizes = [16, 128], strides = [1, 1]} : vector<16x256xf32> to vector<16x128xf32>
    %18 = vector.shape_cast %17 : vector<16x128xf32> to vector<2x8x128xf32>
    %19 = vector.extract_strided_slice %16 {offsets = [0, 128], sizes = [16, 128], strides = [1, 1]} : vector<16x256xf32> to vector<16x128xf32>
    %20 = vector.shape_cast %19 : vector<16x128xf32> to vector<2x8x128xf32>
    %21 = arith.truncf %11 : vector<2x8x128xf32> to vector<2x8x128xbf16>
    %22 = arith.truncf %18 : vector<2x8x128xf32> to vector<2x8x128xbf16>
    "tpu.trace_start"() <{level = 10 : i32, message = "bqd,bkd->bqk"}> : () -> ()
    %cst_14 = arith.constant dense<0.000000e+00> : vector<2x8x8xf32>
    %23 = tpu.matmul %21, %22, %cst_14 {dimension_numbers = #tpu.dot_dimension_numbers<[2], [2], [1], [1], [0, 0, 0, 1, 1, 1], [0], [0]>} : vector<2x8x128xbf16>, vector<2x8x128xbf16>, vector<2x8x8xf32> -> vector<2x8x8xf32>
    "tpu.trace_stop"() : () -> ()
    %cst_15 = arith.constant dense<0xFF800000> : vector<2x8xf32>
    %24 = vector.multi_reduction <maximumf>, %23, %cst_15 [2] : vector<2x8x8xf32> to vector<2x8xf32>
    %25 = vector.shape_cast %24 : vector<2x8xf32> to vector<2x8x1xf32>
    %26 = vector.broadcast %25 : vector<2x8x1xf32> to vector<2x8x8xf32>
    %27 = arith.subf %23, %26 : vector<2x8x8xf32>
    %28 = math.exp %27 : vector<2x8x8xf32>
    %cst_16 = arith.constant dense<0.000000e+00> : vector<2x8xf32>
    %29 = vector.multi_reduction <add>, %28, %cst_16 [2] : vector<2x8x8xf32> to vector<2x8xf32>
    %30 = vector.shape_cast %29 : vector<2x8xf32> to vector<2x8x1xf32>
    %31 = tpu.reciprocal %30 : vector<2x8x1xf32> -> vector<2x8x1xf32>
    %32 = vector.broadcast %31 : vector<2x8x1xf32> to vector<2x8x8xf32>
    %33 = arith.mulf %28, %32 : vector<2x8x8xf32>
    %34 = arith.truncf %33 : vector<2x8x8xf32> to vector<2x8x8xbf16>
    %35 = arith.truncf %20 : vector<2x8x128xf32> to vector<2x8x128xbf16>
    "tpu.trace_start"() <{level = 10 : i32, message = "bqk,bkd->bqd"}> : () -> ()
    %cst_17 = arith.constant dense<0.000000e+00> : vector<2x8x128xf32>
    %36 = tpu.matmul %34, %35, %cst_17 {dimension_numbers = #tpu.dot_dimension_numbers<[2], [1], [1], [2], [0, 0, 0, 1, 1, 2], [0], [0]>} : vector<2x8x8xbf16>, vector<2x8x128xbf16>, vector<2x8x128xf32> -> vector<2x8x128xf32>
    "tpu.trace_stop"() : () -> ()
    %c0_18 = arith.constant 0 : index
    %c0_19 = arith.constant 0 : index
    %c0_20 = arith.constant 0 : index
    %37 = vector.load %arg7[%c0_18, %c0_19, %c0_20] : memref<2x8x128xf32, #tpu.memory_space<vmem>>, vector<2x8x128xf32>
    tpu.vector_store %arg7[%c0_18, %c0_19, %c0_20], %36 {strides = array<i32>} : memref<2x8x128xf32, #tpu.memory_space<vmem>>, vector<2x8x128xf32>,
    return
  }
  func.func @transform_0(%arg0: i32) -> (i32, i32, i32) {
    %c0_i32 = arith.constant 0 : i32
    %c0_i32_0 = arith.constant 0 : i32
    %c0_i32_1 = arith.constant 0 : i32
    return %arg0, %c0_i32, %c0_i32_0 : i32, i32, i32
  }
  func.func @transform_1(%arg0: i32) -> (i32, i32, i32) {
    %c0_i32 = arith.constant 0 : i32
    %c0_i32_0 = arith.constant 0 : i32
    %c0_i32_1 = arith.constant 0 : i32
    return %arg0, %c0_i32, %c0_i32_0 : i32, i32, i32
  }
  func.func @transform_2(%arg0: i32) -> (i32, i32) {
    %c0_i32 = arith.constant 0 : i32
    %c0_i32_0 = arith.constant 0 : i32
    %c0_i32_1 = arith.constant 0 : i32
    return %c0_i32, %c0_i32_0 : i32, i32
  }
  func.func @transform_3(%arg0: i32) -> (i32, i32) {
    %c0_i32 = arith.constant 0 : i32
    %c0_i32_0 = arith.constant 0 : i32
    %c0_i32_1 = arith.constant 0 : i32
    return %c0_i32, %c0_i32_0 : i32, i32
  }
  func.func @transform_4(%arg0: i32) -> (i32, i32) {
    %c0_i32 = arith.constant 0 : i32
    %c0_i32_0 = arith.constant 0 : i32
    %c0_i32_1 = arith.constant 0 : i32
    return %c0_i32, %c0_i32_0 : i32, i32
  }
  func.func @transform_5(%arg0: i32) -> (i32, i32) {
    %c0_i32 = arith.constant 0 : i32
    %c0_i32_0 = arith.constant 0 : i32
    %c0_i32_1 = arith.constant 0 : i32
    return %c0_i32, %c0_i32_0 : i32, i32
  }
  func.func @transform_6(%arg0: i32) -> (i32, i32, i32) {
    %c0_i32 = arith.constant 0 : i32
    %c0_i32_0 = arith.constant 0 : i32
    %c0_i32_1 = arith.constant 0 : i32
    return %arg0, %c0_i32, %c0_i32_0 : i32, i32, i32
  }
}

module attributes {stable_mosaic.version = 11 : i64} {
  func.func @_cross_modal_attn_kernel(%arg0: i32, %arg1: memref<2x8x16xf32, #tpu.memory_space<vmem>>, %arg2: memref<2x8x12xf32, #tpu.memory_space<vmem>>, %arg3: memref<16x128xbf16, #tpu.memory_space<vmem>>, %arg4: memref<1x128xf32, #tpu.memory_space<vmem>>, %arg5: memref<12x256xbf16, #tpu.memory_space<vmem>>, %arg6: memref<1x256xf32, #tpu.memory_space<vmem>>, %arg7: memref<2x8x128xf32, #tpu.memory_space<vmem>>) attributes {dimension_semantics = [#tpu.dimension_semantics<parallel>], iteration_bounds = array<i64: 1>, scalar_prefetch = 0 : i64, scratch_operands = 0 : i64, tpu.core_type = #tpu.core_type<tc>, window_params = [{transform_indices = @transform_0, window_bounds = array<i64: 2, 8, 16>}, {transform_indices = @transform_1, window_bounds = array<i64: 2, 8, 12>}, {pipeline_mode = #tpu.pipeline_mode<synchronous>, transform_indices = @transform_2, window_bounds = array<i64: 16, 128>}, {pipeline_mode = #tpu.pipeline_mode<synchronous>, transform_indices = @transform_3, window_bounds = array<i64: 1, 128>}, {pipeline_mode = #tpu.pipeline_mode<synchronous>, transform_indices = @transform_4, window_bounds = array<i64: 12, 256>}, {pipeline_mode = #tpu.pipeline_mode<synchronous>, transform_indices = @transform_5, window_bounds = array<i64: 1, 256>}, {transform_indices = @transform_6, window_bounds = array<i64: 2, 8, 128>}]} {
    %c0 = arith.constant 0 : index
    %c0_0 = arith.constant 0 : index
    %c0_1 = arith.constant 0 : index
    %0 = vector.load %arg1[%c0, %c0_0, %c0_1] : memref<2x8x16xf32, #tpu.memory_space<vmem>>, vector<2x8x16xf32>
    %1 = vector.shape_cast %0 : vector<2x8x16xf32> to vector<16x16xf32>
    %2 = arith.truncf %1 : vector<16x16xf32> to vector<16x16xbf16>
    %c0_2 = arith.constant 0 : index
    %c0_3 = arith.constant 0 : index
    %c0_4 = arith.constant 0 : index
    %3 = vector.load %arg2[%c0_2, %c0_3, %c0_4] : memref<2x8x12xf32, #tpu.memory_space<vmem>>, vector<2x8x12xf32>
    %4 = vector.shape_cast %3 : vector<2x8x12xf32> to vector<16x12xf32>
    %5 = arith.truncf %4 : vector<16x12xf32> to vector<16x12xbf16>
    %c0_5 = arith.constant 0 : index
    %c0_6 = arith.constant 0 : index
    %6 = vector.load %arg3[%c0_5, %c0_6] : memref<16x128xbf16, #tpu.memory_space<vmem>>, vector<16x128xbf16>
    %cst = arith.constant dense<0.000000e+00> : vector<16x128xf32>
    %7 = tpu.matmul %2, %6, %cst {dimension_numbers = #tpu.dot_dimension_numbers<[1], [0], [0], [1], [0, 0, 1, 1], [], []>} : vector<16x16xbf16>, vector<16x128xbf16>, vector<16x128xf32> -> vector<16x128xf32>
    %c0_7 = arith.constant 0 : index
    %c0_8 = arith.constant 0 : index
    %8 = vector.load %arg4[%c0_7, %c0_8] : memref<1x128xf32, #tpu.memory_space<vmem>>, vector<1x128xf32>
    %9 = vector.broadcast %8 : vector<1x128xf32> to vector<16x128xf32>
    %10 = arith.addf %7, %9 : vector<16x128xf32>
    %11 = vector.shape_cast %10 : vector<16x128xf32> to vector<2x8x128xf32>
    %c0_9 = arith.constant 0 : index
    %c0_10 = arith.constant 0 : index
    %12 = vector.load %arg5[%c0_9, %c0_10] : memref<12x256xbf16, #tpu.memory_space<vmem>>, vector<12x256xbf16>
    %cst_11 = arith.constant dense<0.000000e+00> : vector<16x256xf32>
    %13 = tpu.matmul %5, %12, %cst_11 {dimension_numbers = #tpu.dot_dimension_numbers<[1], [0], [0], [1], [0, 0, 1, 1], [], []>} : vector<16x12xbf16>, vector<12x256xbf16>, vector<16x256xf32> -> vector<16x256xf32>
    %c0_12 = arith.constant 0 : index
    %c0_13 = arith.constant 0 : index
    %14 = vector.load %arg6[%c0_12, %c0_13] : memref<1x256xf32, #tpu.memory_space<vmem>>, vector<1x256xf32>
    %15 = vector.broadcast %14 : vector<1x256xf32> to vector<16x256xf32>
    %16 = arith.addf %13, %15 : vector<16x256xf32>
    %17 = vector.extract_strided_slice %16 {offsets = [0, 0], sizes = [16, 128], strides = [1, 1]} : vector<16x256xf32> to vector<16x128xf32>
    %18 = vector.shape_cast %17 : vector<16x128xf32> to vector<2x8x128xf32>
    %19 = vector.extract_strided_slice %16 {offsets = [0, 128], sizes = [16, 128], strides = [1, 1]} : vector<16x256xf32> to vector<16x128xf32>
    %20 = vector.shape_cast %19 : vector<16x128xf32> to vector<2x8x128xf32>
    %21 = arith.truncf %11 : vector<2x8x128xf32> to vector<2x8x128xbf16>
    %22 = arith.truncf %18 : vector<2x8x128xf32> to vector<2x8x128xbf16>
    "tpu.trace_start"() <{level = 10 : i32, message = "bqd,bkd->bqk"}> : () -> ()
    %cst_14 = arith.constant dense<0.000000e+00> : vector<2x8x8xf32>
    %23 = tpu.matmul %21, %22, %cst_14 {dimension_numbers = #tpu.dot_dimension_numbers<[2], [2], [1], [1], [0, 0, 0, 1, 1, 1], [0], [0]>} : vector<2x8x128xbf16>, vector<2x8x128xbf16>, vector<2x8x8xf32> -> vector<2x8x8xf32>
    "tpu.trace_stop"() : () -> ()
    %cst_15 = arith.constant dense<0xFF800000> : vector<2x8xf32>
    %24 = vector.multi_reduction <maximumf>, %23, %cst_15 [2] : vector<2x8x8xf32> to vector<2x8xf32>
    %25 = vector.shape_cast %24 : vector<2x8xf32> to vector<2x8x1xf32>
    %26 = vector.broadcast %25 : vector<2x8x1xf32> to vector<2x8x8xf32>
    %27 = arith.subf %23, %26 : vector<2x8x8xf32>
    %28 = math.exp %27 : vector<2x8x8xf32>
    %cst_16 = arith.constant dense<0.000000e+00> : vector<2x8xf32>
    %29 = vector.multi_reduction <add>, %28, %cst_16 [2] : vector<2x8x8xf32> to vector<2x8xf32>
    %30 = vector.shape_cast %29 : vector<2x8xf32> to vector<2x8x1xf32>
    %31 = tpu.reciprocal %30 : vector<2x8x1xf32> -> vector<2x8x1xf32>
    %32 = vector.broadcast %31 : vector<2x8x1xf32> to vector<2x8x8xf32>
    %33 = arith.mulf %28, %32 : vector<2x8x8xf32>
    %34 = arith.truncf %33 : vector<2x8x8xf32> to vector<2x8x8xbf16>
    %35 = arith.truncf %20 : vector<2x8x128xf32> to vector<2x8x128xbf16>
    "tpu.trace_start"() <{level = 10 : i32, message = "bqk,bkd->bqd"}> : () -> ()
    %cst_17 = arith.constant dense<0.000000e+00> : vector<2x8x128xf32>
    %36 = tpu.matmul %34, %35, %cst_17 {dimension_numbers = #tpu.dot_dimension_numbers<[2], [1], [1], [2], [0, 0, 0, 1, 1, 2], [0], [0]>} : vector<2x8x8xbf16>, vector<2x8x128xbf16>, vector<2x8x128xf32> -> vector<2x8x128xf32>
    "tpu.trace_stop"() : () -> ()
    %c0_18 = arith.constant 0 : index
    %c0_19 = arith.constant 0 : index
    %c0_20 = arith.constant 0 : index
    %37 = vector.load %arg7[%c0_18, %c0_19, %c0_20] : memref<2x8x128xf32, #tpu.memory_space<vmem>>, vector<2x8x128xf32>
    tpu.vector_store %arg7[%c0_18, %c0_19, %c0_20], %36 {strides = array<i32>} : memref<2x8x128xf32, #tpu.memory_space<vmem>>, vector<2x8x128xf32>,
    return
  }
  func.func @transform_0(%arg0: i32) -> (i32, i32, i32) {
    %c0_i32 = arith.constant 0 : i32
    %c0_i32_0 = arith.constant 0 : i32
    %c0_i32_1 = arith.constant 0 : i32
    return %arg0, %c0_i32, %c0_i32_0 : i32, i32, i32
  }
  func.func @transform_1(%arg0: i32) -> (i32, i32, i32) {
    %c0_i32 = arith.constant 0 : i32
    %c0_i32_0 = arith.constant 0 : i32
    %c0_i32_1 = arith.constant 0 : i32
    return %arg0, %c0_i32, %c0_i32_0 : i32, i32, i32
  }
  func.func @transform_2(%arg0: i32) -> (i32, i32) {
    %c0_i32 = arith.constant 0 : i32
    %c0_i32_0 = arith.constant 0 : i32
    %c0_i32_1 = arith.constant 0 : i32
    return %c0_i32, %c0_i32_0 : i32, i32
  }
  func.func @transform_3(%arg0: i32) -> (i32, i32) {
    %c0_i32 = arith.constant 0 : i32
    %c0_i32_0 = arith.constant 0 : i32
    %c0_i32_1 = arith.constant 0 : i32
    return %c0_i32, %c0_i32_0 : i32, i32
  }
  func.func @transform_4(%arg0: i32) -> (i32, i32) {
    %c0_i32 = arith.constant 0 : i32
    %c0_i32_0 = arith.constant 0 : i32
    %c0_i32_1 = arith.constant 0 : i32
    return %c0_i32, %c0_i32_0 : i32, i32
  }
  func.func @transform_5(%arg0: i32) -> (i32, i32) {
    %c0_i32 = arith.constant 0 : i32
    %c0_i32_0 = arith.constant 0 : i32
    %c0_i32_1 = arith.constant 0 : i32
    return %c0_i32, %c0_i32_0 : i32, i32
  }
  func.func @transform_6(%arg0: i32) -> (i32, i32, i32) {
    %c0_i32 = arith.constant 0 : i32
    %c0_i32_0 = arith.constant 0 : i32
    %c0_i32_1 = arith.constant 0 : i32
    return %arg0, %c0_i32, %c0_i32_0 : i32, i32, i32
  }
}

</mosaic_0001>

<bundles_post_ra>
// kernel: tpu_custom_call.1
= control target key start
LH: loop header
LB: loop body
LE: loop exit
PB: predicated region body
PF: predicated region fallthrough
CT: control target
= control target key end

     0   :  { %11 = vsyncpa [#allocation3], 0  ;;  %s791_s0 = inlined_call_operand.hbm [shape: f32[2,8,16], index: 0, kind: input, shape index: {}]   ;;  %s792_s1 = inlined_call_operand.hbm [shape: f32[2,8,12], index: 1, kind: input, shape index: {}]   ;;  %s793_s2 = inlined_call_operand.hbm [shape: bf16[16,128], index: 2, kind: input, shape index: {}]   ;;  %s794_s3 = inlined_call_operand.vmem [shape: f32[1,128], index: 3, kind: input, shape index: {}]   ;;  %s795_s4 = inlined_call_operand.hbm [shape: bf16[12,256], index: 4, kind: input, shape index: {}]   ;;  %s796_s5 = inlined_call_operand.vmem [shape: f32[1,256], index: 5, kind: input, shape index: {}]   ;;  %s797_s6 = inlined_call_operand.hbm [shape: f32[2,8,128], index: 6, kind: output, shape index: {}]  }
   0x1   :  { %12 = vsyncpa [#allocation6], 0 }
   0x2   :  { %13 = vsyncpa [#allocation9], 0 }
   0x3   :  { %14 = vsyncpa [#allocation4], 0  ;;  %s638_s21 = smov [#allocation5]   ;;  %s639_s23 = smov [#allocation2]  }
   0x4   :  { %s32_s22 = sshll.u32 %s638_s21, 4  ;;  %s20_s24 = sshll.u32 %s639_s23, 4  ;;  %s33_s22 = int_to_ptr.vmem [resolvable:$true] %s32_s22  ;;  %s685_s24 = int_to_ptr.vmem [resolvable:$true] %s20_s24 }
   0x5   :  { %s520_s27 = scalar_lea.hbm %s792_s1, 256 }
   0x6   :  { %p521_p0 = scmp.ne.s32.totalorder %s792_s1, %s520_s27  ;;  %p524_p1 = scmp.lt.u32.totalorder %s520_s27, %s792_s1 }
   0x8   :  { %p526_p2 = pnand %p524_p1, %p521_p0 }
   0xa   :  { %529 = shalt.err (!%p526_p2)
}
   0xb   :  { %s530_s8 = scalar_lea.vmem %s33_s22, 256  ;;  %p535_p4 = scmp.lt.s32.totalorder %s33_s22, %s33_s22 }
   0xc   :  { %p531_p3 = scmp.ne.s32.totalorder %s33_s22, %s530_s8  ;;  %p536_p5 = scmp.lt.s32.totalorder %s530_s8, %s530_s8 }
   0xe   :  { %p537_p6 = por %p536_p5, %p535_p4 }
  0x10   :  { %p538_p7 = pnand %p537_p6, %p531_p3 }
  0x12   :  { %541 = shalt.err (!%p538_p7)
}
  0x13   :  { %s640_s9 = smov 128   ;;  %s641_s10 = smov 8  }
  0x14   :  { %38 = dma.hbm_to_vmem [thread:$0]  %s792_s1, 256, %s33_s22, [#allocation6], %s640_s9, %s640_s9, %s641_s10  }
  0x15   :  { %s542_s15 = scalar_lea.hbm %s791_s0, 256 }
  0x16   :  { %p543_p8 = scmp.ne.s32.totalorder %s791_s0, %s542_s15  ;;  %p546_p9 = scmp.lt.u32.totalorder %s542_s15, %s791_s0 }
  0x18   :  { %p548_p10 = pnand %p546_p9, %p543_p8 }
  0x1a   :  { %551 = shalt.err (!%p548_p10)
}
  0x1b   :  { %s552_s20 = scalar_lea.vmem %s685_s24, 256  ;;  %p557_p12 = scmp.lt.s32.totalorder %s685_s24, %s685_s24 }
  0x1c   :  { %p553_p11 = scmp.ne.s32.totalorder %s685_s24, %s552_s20  ;;  %p558_p13 = scmp.lt.s32.totalorder %s552_s20, %s552_s20 }
  0x1e   :  { %p559_p0 = por %p558_p13, %p557_p12 }
  0x20   :  { %p560_p1 = pnand %p559_p0, %p553_p11 }
  0x22   :  { %563 = shalt.err (!%p560_p1)
}
  0x23   :  { %26 = dma.hbm_to_vmem [thread:$0]  %s791_s0, 256, %s685_s24, [#allocation3], %s640_s9, %s640_s9, %s641_s10  }
  0x24   :  { %s642_s22 = smov [#allocation7]   ;;  %s564_s27 = scalar_lea.hbm %s793_s2, 128 }
  0x25   :  { %s44_s23 = sshll.u32 %s642_s22, 4  ;;  %p565_p2 = scmp.ne.s32.totalorder %s793_s2, %s564_s27  ;;  %s45_s23 = int_to_ptr.vmem [resolvable:$true] %s44_s23 }
  0x26   :  { %p568_p3 = scmp.lt.u32.totalorder %s564_s27, %s793_s2 }
  0x28   :  { %p570_p4 = pnand %p568_p3, %p565_p2 }
  0x2a   :  { %573 = shalt.err (!%p570_p4)
}
  0x2b   :  { %s574_s8 = scalar_lea.vmem %s45_s23, 128  ;;  %p579_p6 = scmp.lt.s32.totalorder %s45_s23, %s45_s23 }
  0x2c   :  { %p575_p5 = scmp.ne.s32.totalorder %s45_s23, %s574_s8  ;;  %p580_p7 = scmp.lt.s32.totalorder %s574_s8, %s574_s8 }
  0x2e   :  { %p581_p8 = por %p580_p7, %p579_p6 }
  0x30   :  { %p582_p9 = pnand %p581_p8, %p575_p5 }
  0x32   :  { %585 = shalt.err (!%p582_p9)
}
  0x33   :  { %s643_s0 = smov 64   ;;  %s644_s24 = smov 4  }
  0x34   :  { %50 = dma.hbm_to_vmem [thread:$0]  %s793_s2, 128, %s45_s23, [#allocation6], %s643_s0, %s643_s0, %s644_s24  }
  0x35   :  { %s645_s13 = smov [#allocation8]   ;;  %s586_s17 = scalar_lea.hbm %s795_s4, 256 }
  0x36   :  { %s58_s14 = sshll.u32 %s645_s13, 4  ;;  %p587_p10 = scmp.ne.s32.totalorder %s795_s4, %s586_s17  ;;  %s59_s14 = int_to_ptr.vmem [resolvable:$true] %s58_s14 }
  0x37   :  { %p590_p11 = scmp.lt.u32.totalorder %s586_s17, %s795_s4 }
  0x39   :  { %p592_p12 = pnand %p590_p11, %p587_p10 }
  0x3b   :  { %595 = shalt.err (!%p592_p12)
}
  0x3c   :  { %s596_s21 = scalar_lea.vmem %s59_s14, 256  ;;  %p601_p0 = scmp.lt.s32.totalorder %s59_s14, %s59_s14 }
  0x3d   :  { %p597_p13 = scmp.ne.s32.totalorder %s59_s14, %s596_s21  ;;  %p602_p1 = scmp.lt.s32.totalorder %s596_s21, %s596_s21 }
  0x3f   :  { %p603_p2 = por %p602_p1, %p601_p0 }
  0x41   :  { %p604_p3 = pnand %p603_p2, %p597_p13 }
  0x43   :  { %607 = shalt.err (!%p604_p3)
}
  0x44   :  { %64 = dma.hbm_to_vmem [thread:$0]  %s795_s4, 256, %s59_s14, [#allocation9], %s640_s9, %s640_s9, %s641_s10  }
  0x45   :  { %630 = dma.done.wait [#allocation3], 256  }
  0x46   :  { %631 = vsyncadd [#allocation3], 4294967040 }
  0x47   :  { %632 = dma.done.wait [#allocation6], 384  }
  0x48   :  { %633 = vsyncadd [#allocation6], 4294966912 }
  0x49   :  { %634 = dma.done.wait [#allocation9], 256  }
  0x4a   :  { %635 = vsyncadd [#allocation9], 4294967040  ;;  %v646_v0 = vmov 0   ;;  %v647_v1 = vmov 0.0   ;;  %vm648_vm0 = vmmov 0   ;;  %vm172_vm1 = vcmask 1045504  }
  0x4b   :  { %211 = vmatprep.mubr.bf16.mxu1 %v646_v0  ;;  %466 = vmatprep.subr.bf16.mxu0 %v647_v1  ;;  %v508_v2 = vld [vmem:[#allocation8 + $0x4] ss:$8 sps:$4 sm:$0x3f]   ;;  %v510_v3 = vld [vmem:[#allocation8] ss:$8 sps:$4 sm:$0x3f]   ;;  %v150_v12 = vlaneseq }
  0x4c   :  { %468 = vmatprep.mubr.msk.bf16.mxu0 %vm648_vm0, %v647_v1  ;;  %v83_v4 = vld [vmem:[#allocation5] sm:$0xff]  ;;  %v84_v5 = vld [vmem:[#allocation5 + $0x8] sm:$0xff]  ;;  %452 = vmatprep.subr.msk.bf16.mxu1 %vm172_vm1, %v508_v2  ;;  %v511_v6 = vld [vmem:[#allocation7] sm:$0xff]   ;;  %v174_v7 = vsel %vm172_vm1, %v510_v3, 0  ;;  %vm168_vm2 = vcmask 97280   ;;  %vm101_vm3 = vcmask 130048  }
  0x4d   :  { %v85_v8 = vpack.c.bf16 %v84_v5, %v83_v4  ;;  %v80_v9 = vld [vmem:[#allocation2] sm:$0xff]  ;;  %v81_v10 = vld [vmem:[#allocation2 + $0x8] sm:$0xff]  ;;  %180 = vmatpush1.bf16.msra.mxu1 %v174_v7  ;;  %467 = vmatpush3.bf16.msra.mxu0 %v511_v6  ;;  %v151_v13 = vshrl.u32 %v150_v12, 7  ;;  %vm336_vm4 = vcmask 1043456   ;;  %vm306_vm5 = vcmask 64512  }
  0x4e   :  { %v82_v11 = vpack.c.bf16 %v81_v10, %v80_v9  ;;  %472 = vmatprep.subr.bf16.mxu0 %v647_v1  ;;  %478 = vmatprep.subr.bf16.mxu1 %v647_v1  ;;  %v148_v15 = vld [vmem:[%s796_s5] sm:$0x3] }
  0x4f   :  { %v152_v14 = vsub.s32 0, %v151_v13  ;;  %v156_v16 = vsub.s32 1, %v151_v13  ;;  %v447_v23 = vld [vmem:[%s794_s3] ss:$0 sm:$0xff]  ;;  %s649_s3 = smov [#allocation10]  }
  0x50   :  { %453 = vmatmul.mubr.msk.bf16.vlgmr.msra.gmra.mrb[0].mxu1 %vm168_vm2, %v85_v8  ;;  %469 = vmatmul.mubr.msk.bf16.vlgmr.msra.gmra.mrb[0].mxu0 %vm101_vm3, %v82_v11  ;;  %s433_s5 = sshll.u32 %s649_s3, 4  ;;  %s434_s5 = int_to_ptr.vmem [resolvable:$true] %s433_s5 }
  0x51   :  { %474 = vmatprep.mubr.msk.bf16.mxu0 %vm648_vm0, %v647_v1  ;;  %480 = vmatprep.mubr.msk.bf16.mxu1 %vm648_vm0, %v647_v1  ;;  %v153_v17 = vrot.slane %v148_v15, %v152_v14  ;;  %v157_v19 = vrot.slane %v148_v15, %v156_v16  ;;  %s608_s27 = scalar_lea.vmem %s434_s5, 256  ;;  %p613_p5 = scmp.lt.s32.totalorder %s434_s5, %s434_s5 }
  0x52   :  { %p609_p4 = scmp.ne.s32.totalorder %s434_s5, %s608_s27  ;;  %p614_p6 = scmp.lt.s32.totalorder %s608_s27, %s608_s27 }
  0x54   :  { %p615_p7 = por %p614_p6, %p613_p5 }
  0x56   :  { %p616_p8 = pnand %p615_p7, %p609_p4 }
 0x123   :  { %v213_v18 = vpop.f32.mrb[0].mxu1  ;;  %v139_v20 = vpop.f32.mrb[0].mxu0 }
 0x124   :  { %v214_v21 = vadd.f32 %v213_v18, %v153_v17  ;;  %v215_v22 = vpop.f32.mrb[1].mxu1  ;;  %v470_v24 = vpop.f32.mrb[1].mxu0  ;;  %v140_v32 = vadd.f32 %v447_v23, %v139_v20 }
 0x125   :  { %v217_v25 = vpop.f32.mrb[2].mxu1  ;;  %v142_v26 = vpop.f32.mrb[2].mxu0  ;;  %v216_v31 = vadd.f32 %v215_v22, %v157_v19 }
 0x126   :  { %v224_v27 = vpack.c.bf16 %v214_v21, %v214_v21  ;;  %v218_v28 = vadd.f32 %v217_v25, %v153_v17  ;;  %v219_v29 = vpop.f32.mrb[3].mxu1  ;;  %v471_v30 = vpop.f32.mrb[3].mxu0  ;;  %v222_v36 = vpack.c.bf16 %v140_v32, %v140_v32  ;;  %v143_v37 = vadd.f32 %v447_v23, %v142_v26 }
 0x127   :  { %v220_v34 = vadd.f32 %v219_v29, %v157_v19  ;;  %v331_v35 = vpack.c.bf16 %v216_v31, %v216_v31 }
 0x128   :  { %v225_v33 = vpack.c.bf16 %v218_v28, %v218_v28  ;;  %473 = vmatpush3.bf16.xpose.msra.mxu0 %v224_v27  ;;  %v223_v40 = vpack.c.bf16 %v143_v37, %v143_v37 }
 0x129   :  { %484 = vmatprep.subr.bf16.mxu0 %v647_v1  ;;  %v332_v38 = vpack.c.bf16 %v220_v34, %v220_v34  ;;  %v338_v39 = vsel %vm336_vm4, %v331_v35, 0 }
 0x12a   :  { %479 = vmatpush3.bf16.xpose.msra.mxu1 %v225_v33 }
 0x12b   :  { %490 = vmatprep.subr.bf16.mxu1 %v647_v1  ;;  %v384_v41 = vsel %vm336_vm4, %v332_v38, 0 }
 0x12f   :  { %475 = vmatmul.mubr.bf16.vlgmr.msra.gmra.mrb[4].mxu0 %v222_v36 }
 0x130   :  { %485 = vmatpush3.bf16.msra.mxu0 %v338_v39  ;;  %486 = vmatprep.mubr.msk.bf16.mxu0 %vm648_vm0, %v647_v1 }
 0x131   :  { %481 = vmatmul.mubr.bf16.vlgmr.msra.gmra.mrb[4].mxu1 %v223_v40 }
 0x132   :  { %491 = vmatpush3.bf16.msra.mxu1 %v384_v41  ;;  %492 = vmatprep.mubr.msk.bf16.mxu1 %vm648_vm0, %v647_v1 }
 0x202   :  { %v260_v42 = vpop.f32.mrb[4].mxu0 }
 0x203   :  { %v476_v43 = vpop.f32.mrb[5].mxu0  ;;  %v307_v44 = vsel %vm306_vm5, %v260_v42, -inf }
 0x204   :  { %v300_v45 = vpop.f32.mrb[4].mxu1  ;;  %308 = vmax.xlane.f32.xlu0 %v307_v44  ;;  %v263_v46 = vpop.f32.mrb[6].mxu0 }
 0x205   :  { %v477_v47 = vpop.f32.mrb[7].mxu0  ;;  %v482_v48 = vpop.f32.mrb[5].mxu1  ;;  %v310_v51 = vsel %vm306_vm5, %v300_v45, -inf }
 0x206   :  { %v303_v49 = vpop.f32.mrb[6].mxu1 }
 0x207   :  { %v483_v50 = vpop.f32.mrb[7].mxu1 }
 0x208   :  { %311 = vmax.xlane.f32.xlu0 %v310_v51 }
 0x291   :  { %v309_v52 = vpop.xlane.xlu0 %308 }
 0x292   :  { %v313_v53 = vsub.f32 %v260_v42, %v309_v52 }
 0x294   :  { %v315_v54 = vmul.f32 1.442695, %v313_v53 }
 0x295   :  { %v312_v55 = vpop.xlane.xlu0 %311 }
 0x296   :  { %512 = vpow2.f32 %v315_v54  ;;  %v314_v56 = vsub.f32 %v300_v45, %v312_v55 }
 0x298   :  { %v317_v57 = vmul.f32 1.442695, %v314_v56 }
 0x29a   :  { %514 = vpow2.f32 %v317_v57 }
 0x2a0   :  { %v513_v58 = vpop.eup %512 }
 0x2a1   :  { %v319_v59 = vsel %vm306_vm5, %v513_v58, 0.0 }
 0x2a2   :  { %320 = vadd.xlane.f32.xlu1 %v319_v59 }
 0x2a4   :  { %v515_v60 = vpop.eup %514 }
 0x2a5   :  { %v322_v61 = vsel %vm306_vm5, %v515_v60, 0.0 }
 0x2a6   :  { %323 = vadd.xlane.f32.xlu1 %v322_v61 }
 0x32f   :  { %v321_v62 = vpop.xlane.xlu1 %320 }
 0x330   :  { %516 = vrcp.f32 %v321_v62 }
 0x333   :  { %v324_v63 = vpop.xlane.xlu1 %323 }
 0x334   :  { %518 = vrcp.f32 %v324_v63 }
 0x33a   :  { %v517_v0 = vpop.eup %516 }
 0x33b   :  { %v327_v1 = vmul.f32 %v517_v0, %v513_v58 }
 0x33d   :  { %v329_v2 = vpack.c.bf16 %v327_v1, %v327_v1 }
 0x33e   :  { %v519_v3 = vpop.eup %518 }
 0x33f   :  { %v328_v4 = vmul.f32 %v519_v3, %v515_v60  ;;  %487 = vmatmul.mubr.msk.bf16.vlgmr.msra.gmra.mrb[8].mxu0 %vm306_vm5, %v329_v2 }
 0x341   :  { %v330_v5 = vpack.c.bf16 %v328_v4, %v328_v4 }
 0x343   :  { %493 = vmatmul.mubr.msk.bf16.vlgmr.msra.gmra.mrb[8].mxu1 %vm306_vm5, %v330_v5 }
 0x412   :  { %v374_v6 = vpop.f32.mrb[8].mxu0 }
 0x413   :  { %426 = vst [vmem:[#allocation10] sm:$0xff] %v374_v6  ;;  %v488_v7 = vpop.f32.mrb[9].mxu0 }
 0x414   :  { %v377_v8 = vpop.f32.mrb[10].mxu0 }
 0x415   :  { %v489_v9 = vpop.f32.mrb[11].mxu0 }
 0x416   :  { %v420_v10 = vpop.f32.mrb[8].mxu1 }
 0x417   :  { %427 = vst [vmem:[#allocation10 + $0x8] sm:$0xff] %v420_v10  ;;  %v494_v11 = vpop.f32.mrb[9].mxu1 }
 0x418   :  { %v423_v12 = vpop.f32.mrb[10].mxu1 }
 0x419   :  { %619 = shalt.err (!%p616_p8)
}
 0x41a   :  { %s620_s30 = scalar_lea.hbm %s797_s6, 256 }
 0x41b   :  { %p621_p9 = scmp.ne.s32.totalorder %s797_s6, %s620_s30  ;;  %p624_p10 = scmp.lt.u32.totalorder %s620_s30, %s797_s6 }
 0x41d   :  { %p626_p11 = pnand %p624_p10, %p621_p9 }
 0x41f   :  { %629 = shalt.err (!%p626_p11)
}
 0x420   :  { %439 = dma.vmem_to_hbm [thread:$0]  %s434_s5, 256, %s797_s6, [#allocation4], %s640_s9, %s640_s9, %s641_s10   ;;  %v495_v13 = vpop.f32.mrb[11].mxu1 }
 0x421   :  { %636 = dma.done.wait [#allocation4], 256  }
 0x422   :  { %637 = vsyncadd [#allocation4], 4294967040 }
 0x423   :  { %443 = vsyncpa [#allocation3], 1 }
 0x424   :  { %444 = vsyncpa [#allocation6], 1 }
 0x425   :  { %445 = vsyncpa [#allocation9], 1 }
 0x426   :  { %446 = vsyncpa [#allocation4], 1 }

// kernel: tpu_custom_call.1
= control target key start
LH: loop header
LB: loop body
LE: loop exit
PB: predicated region body
PF: predicated region fallthrough
CT: control target
= control target key end

     0   :  { %11 = vsyncpa [#allocation3], 0  ;;  %s791_s0 = inlined_call_operand.hbm [shape: f32[2,8,16], index: 0, kind: input, shape index: {}]   ;;  %s792_s1 = inlined_call_operand.hbm [shape: f32[2,8,12], index: 1, kind: input, shape index: {}]   ;;  %s793_s2 = inlined_call_operand.hbm [shape: bf16[16,128], index: 2, kind: input, shape index: {}]   ;;  %s794_s3 = inlined_call_operand.vmem [shape: f32[1,128], index: 3, kind: input, shape index: {}]   ;;  %s795_s4 = inlined_call_operand.hbm [shape: bf16[12,256], index: 4, kind: input, shape index: {}]   ;;  %s796_s5 = inlined_call_operand.vmem [shape: f32[1,256], index: 5, kind: input, shape index: {}]   ;;  %s797_s6 = inlined_call_operand.hbm [shape: f32[2,8,128], index: 6, kind: output, shape index: {}]  }
   0x1   :  { %12 = vsyncpa [#allocation6], 0 }
   0x2   :  { %13 = vsyncpa [#allocation9], 0 }
   0x3   :  { %14 = vsyncpa [#allocation4], 0  ;;  %s638_s21 = smov [#allocation5]   ;;  %s639_s23 = smov [#allocation2]  }
   0x4   :  { %s32_s22 = sshll.u32 %s638_s21, 4  ;;  %s20_s24 = sshll.u32 %s639_s23, 4  ;;  %s33_s22 = int_to_ptr.vmem [resolvable:$true] %s32_s22  ;;  %s685_s24 = int_to_ptr.vmem [resolvable:$true] %s20_s24 }
   0x5   :  { %s520_s27 = scalar_lea.hbm %s792_s1, 256 }
   0x6   :  { %p521_p0 = scmp.ne.s32.totalorder %s792_s1, %s520_s27  ;;  %p524_p1 = scmp.lt.u32.totalorder %s520_s27, %s792_s1 }
   0x8   :  { %p526_p2 = pnand %p524_p1, %p521_p0 }
   0xa   :  { %529 = shalt.err (!%p526_p2)
}
   0xb   :  { %s530_s8 = scalar_lea.vmem %s33_s22, 256  ;;  %p535_p4 = scmp.lt.s32.totalorder %s33_s22, %s33_s22 }
   0xc   :  { %p531_p3 = scmp.ne.s32.totalorder %s33_s22, %s530_s8  ;;  %p536_p5 = scmp.lt.s32.totalorder %s530_s8, %s530_s8 }
   0xe   :  { %p537_p6 = por %p536_p5, %p535_p4 }
  0x10   :  { %p538_p7 = pnand %p537_p6, %p531_p3 }
  0x12   :  { %541 = shalt.err (!%p538_p7)
}
  0x13   :  { %s640_s9 = smov 128   ;;  %s641_s10 = smov 8  }
  0x14   :  { %38 = dma.hbm_to_vmem [thread:$0]  %s792_s1, 256, %s33_s22, [#allocation6], %s640_s9, %s640_s9, %s641_s10  }
  0x15   :  { %s542_s15 = scalar_lea.hbm %s791_s0, 256 }
  0x16   :  { %p543_p8 = scmp.ne.s32.totalorder %s791_s0, %s542_s15  ;;  %p546_p9 = scmp.lt.u32.totalorder %s542_s15, %s791_s0 }
  0x18   :  { %p548_p10 = pnand %p546_p9, %p543_p8 }
  0x1a   :  { %551 = shalt.err (!%p548_p10)
}
  0x1b   :  { %s552_s20 = scalar_lea.vmem %s685_s24, 256  ;;  %p557_p12 = scmp.lt.s32.totalorder %s685_s24, %s685_s24 }
  0x1c   :  { %p553_p11 = scmp.ne.s32.totalorder %s685_s24, %s552_s20  ;;  %p558_p13 = scmp.lt.s32.totalorder %s552_s20, %s552_s20 }
  0x1e   :  { %p559_p0 = por %p558_p13, %p557_p12 }
  0x20   :  { %p560_p1 = pnand %p559_p0, %p553_p11 }
  0x22   :  { %563 = shalt.err (!%p560_p1)
}
  0x23   :  { %26 = dma.hbm_to_vmem [thread:$0]  %s791_s0, 256, %s685_s24, [#allocation3], %s640_s9, %s640_s9, %s641_s10  }
  0x24   :  { %s642_s22 = smov [#allocation7]   ;;  %s564_s27 = scalar_lea.hbm %s793_s2, 128 }
  0x25   :  { %s44_s23 = sshll.u32 %s642_s22, 4  ;;  %p565_p2 = scmp.ne.s32.totalorder %s793_s2, %s564_s27  ;;  %s45_s23 = int_to_ptr.vmem [resolvable:$true] %s44_s23 }
  0x26   :  { %p568_p3 = scmp.lt.u32.totalorder %s564_s27, %s793_s2 }
  0x28   :  { %p570_p4 = pnand %p568_p3, %p565_p2 }
  0x2a   :  { %573 = shalt.err (!%p570_p4)
}
  0x2b   :  { %s574_s8 = scalar_lea.vmem %s45_s23, 128  ;;  %p579_p6 = scmp.lt.s32.totalorder %s45_s23, %s45_s23 }
  0x2c   :  { %p575_p5 = scmp.ne.s32.totalorder %s45_s23, %s574_s8  ;;  %p580_p7 = scmp.lt.s32.totalorder %s574_s8, %s574_s8 }
  0x2e   :  { %p581_p8 = por %p580_p7, %p579_p6 }
  0x30   :  { %p582_p9 = pnand %p581_p8, %p575_p5 }
  0x32   :  { %585 = shalt.err (!%p582_p9)
}
  0x33   :  { %s643_s0 = smov 64   ;;  %s644_s24 = smov 4  }
  0x34   :  { %50 = dma.hbm_to_vmem [thread:$0]  %s793_s2, 128, %s45_s23, [#allocation6], %s643_s0, %s643_s0, %s644_s24  }
  0x35   :  { %s645_s13 = smov [#allocation8]   ;;  %s586_s17 = scalar_lea.hbm %s795_s4, 256 }
  0x36   :  { %s58_s14 = sshll.u32 %s645_s13, 4  ;;  %p587_p10 = scmp.ne.s32.totalorder %s795_s4, %s586_s17  ;;  %s59_s14 = int_to_ptr.vmem [resolvable:$true] %s58_s14 }
  0x37   :  { %p590_p11 = scmp.lt.u32.totalorder %s586_s17, %s795_s4 }
  0x39   :  { %p592_p12 = pnand %p590_p11, %p587_p10 }
  0x3b   :  { %595 = shalt.err (!%p592_p12)
}
  0x3c   :  { %s596_s21 = scalar_lea.vmem %s59_s14, 256  ;;  %p601_p0 = scmp.lt.s32.totalorder %s59_s14, %s59_s14 }
  0x3d   :  { %p597_p13 = scmp.ne.s32.totalorder %s59_s14, %s596_s21  ;;  %p602_p1 = scmp.lt.s32.totalorder %s596_s21, %s596_s21 }
  0x3f   :  { %p603_p2 = por %p602_p1, %p601_p0 }
  0x41   :  { %p604_p3 = pnand %p603_p2, %p597_p13 }
  0x43   :  { %607 = shalt.err (!%p604_p3)
}
  0x44   :  { %64 = dma.hbm_to_vmem [thread:$0]  %s795_s4, 256, %s59_s14, [#allocation9], %s640_s9, %s640_s9, %s641_s10  }
  0x45   :  { %630 = dma.done.wait [#allocation3], 256  }
  0x46   :  { %631 = vsyncadd [#allocation3], 4294967040 }
  0x47   :  { %632 = dma.done.wait [#allocation6], 384  }
  0x48   :  { %633 = vsyncadd [#allocation6], 4294966912 }
  0x49   :  { %634 = dma.done.wait [#allocation9], 256  }
  0x4a   :  { %635 = vsyncadd [#allocation9], 4294967040  ;;  %v646_v0 = vmov 0   ;;  %v647_v1 = vmov 0.0   ;;  %vm648_vm0 = vmmov 0   ;;  %vm172_vm1 = vcmask 1045504  }
  0x4b   :  { %211 = vmatprep.mubr.bf16.mxu1 %v646_v0  ;;  %466 = vmatprep.subr.bf16.mxu0 %v647_v1  ;;  %v508_v2 = vld [vmem:[#allocation8 + $0x4] ss:$8 sps:$4 sm:$0x3f]   ;;  %v510_v3 = vld [vmem:[#allocation8] ss:$8 sps:$4 sm:$0x3f]   ;;  %v150_v12 = vlaneseq }
  0x4c   :  { %468 = vmatprep.mubr.msk.bf16.mxu0 %vm648_vm0, %v647_v1  ;;  %v83_v4 = vld [vmem:[#allocation5] sm:$0xff]  ;;  %v84_v5 = vld [vmem:[#allocation5 + $0x8] sm:$0xff]  ;;  %452 = vmatprep.subr.msk.bf16.mxu1 %vm172_vm1, %v508_v2  ;;  %v511_v6 = vld [vmem:[#allocation7] sm:$0xff]   ;;  %v174_v7 = vsel %vm172_vm1, %v510_v3, 0  ;;  %vm168_vm2 = vcmask 97280   ;;  %vm101_vm3 = vcmask 130048  }
  0x4d   :  { %v85_v8 = vpack.c.bf16 %v84_v5, %v83_v4  ;;  %v80_v9 = vld [vmem:[#allocation2] sm:$0xff]  ;;  %v81_v10 = vld [vmem:[#allocation2 + $0x8] sm:$0xff]  ;;  %180 = vmatpush1.bf16.msra.mxu1 %v174_v7  ;;  %467 = vmatpush3.bf16.msra.mxu0 %v511_v6  ;;  %v151_v13 = vshrl.u32 %v150_v12, 7  ;;  %vm336_vm4 = vcmask 1043456   ;;  %vm306_vm5 = vcmask 64512  }
  0x4e   :  { %v82_v11 = vpack.c.bf16 %v81_v10, %v80_v9  ;;  %472 = vmatprep.subr.bf16.mxu0 %v647_v1  ;;  %478 = vmatprep.subr.bf16.mxu1 %v647_v1  ;;  %v148_v15 = vld [vmem:[%s796_s5] sm:$0x3] }
  0x4f   :  { %v152_v14 = vsub.s32 0, %v151_v13  ;;  %v156_v16 = vsub.s32 1, %v151_v13  ;;  %v447_v23 = vld [vmem:[%s794_s3] ss:$0 sm:$0xff]  ;;  %s649_s3 = smov [#allocation10]  }
  0x50   :  { %453 = vmatmul.mubr.msk.bf16.vlgmr.msra.gmra.mrb[0].mxu1 %vm168_vm2, %v85_v8  ;;  %469 = vmatmul.mubr.msk.bf16.vlgmr.msra.gmra.mrb[0].mxu0 %vm101_vm3, %v82_v11  ;;  %s433_s5 = sshll.u32 %s649_s3, 4  ;;  %s434_s5 = int_to_ptr.vmem [resolvable:$true] %s433_s5 }
  0x51   :  { %474 = vmatprep.mubr.msk.bf16.mxu0 %vm648_vm0, %v647_v1  ;;  %480 = vmatprep.mubr.msk.bf16.mxu1 %vm648_vm0, %v647_v1  ;;  %v153_v17 = vrot.slane %v148_v15, %v152_v14  ;;  %v157_v19 = vrot.slane %v148_v15, %v156_v16  ;;  %s608_s27 = scalar_lea.vmem %s434_s5, 256  ;;  %p613_p5 = scmp.lt.s32.totalorder %s434_s5, %s434_s5 }
  0x52   :  { %p609_p4 = scmp.ne.s32.totalorder %s434_s5, %s608_s27  ;;  %p614_p6 = scmp.lt.s32.totalorder %s608_s27, %s608_s27 }
  0x54   :  { %p615_p7 = por %p614_p6, %p613_p5 }
  0x56   :  { %p616_p8 = pnand %p615_p7, %p609_p4 }
 0x123   :  { %v213_v18 = vpop.f32.mrb[0].mxu1  ;;  %v139_v20 = vpop.f32.mrb[0].mxu0 }
 0x124   :  { %v214_v21 = vadd.f32 %v213_v18, %v153_v17  ;;  %v215_v22 = vpop.f32.mrb[1].mxu1  ;;  %v470_v24 = vpop.f32.mrb[1].mxu0  ;;  %v140_v32 = vadd.f32 %v447_v23, %v139_v20 }
 0x125   :  { %v217_v25 = vpop.f32.mrb[2].mxu1  ;;  %v142_v26 = vpop.f32.mrb[2].mxu0  ;;  %v216_v31 = vadd.f32 %v215_v22, %v157_v19 }
 0x126   :  { %v224_v27 = vpack.c.bf16 %v214_v21, %v214_v21  ;;  %v218_v28 = vadd.f32 %v217_v25, %v153_v17  ;;  %v219_v29 = vpop.f32.mrb[3].mxu1  ;;  %v471_v30 = vpop.f32.mrb[3].mxu0  ;;  %v222_v36 = vpack.c.bf16 %v140_v32, %v140_v32  ;;  %v143_v37 = vadd.f32 %v447_v23, %v142_v26 }
 0x127   :  { %v220_v34 = vadd.f32 %v219_v29, %v157_v19  ;;  %v331_v35 = vpack.c.bf16 %v216_v31, %v216_v31 }
 0x128   :  { %v225_v33 = vpack.c.bf16 %v218_v28, %v218_v28  ;;  %473 = vmatpush3.bf16.xpose.msra.mxu0 %v224_v27  ;;  %v223_v40 = vpack.c.bf16 %v143_v37, %v143_v37 }
 0x129   :  { %484 = vmatprep.subr.bf16.mxu0 %v647_v1  ;;  %v332_v38 = vpack.c.bf16 %v220_v34, %v220_v34  ;;  %v338_v39 = vsel %vm336_vm4, %v331_v35, 0 }
 0x12a   :  { %479 = vmatpush3.bf16.xpose.msra.mxu1 %v225_v33 }
 0x12b   :  { %490 = vmatprep.subr.bf16.mxu1 %v647_v1  ;;  %v384_v41 = vsel %vm336_vm4, %v332_v38, 0 }
 0x12f   :  { %475 = vmatmul.mubr.bf16.vlgmr.msra.gmra.mrb[4].mxu0 %v222_v36 }
 0x130   :  { %485 = vmatpush3.bf16.msra.mxu0 %v338_v39  ;;  %486 = vmatprep.mubr.msk.bf16.mxu0 %vm648_vm0, %v647_v1 }
 0x131   :  { %481 = vmatmul.mubr.bf16.vlgmr.msra.gmra.mrb[4].mxu1 %v223_v40 }
 0x132   :  { %491 = vmatpush3.bf16.msra.mxu1 %v384_v41  ;;  %492 = vmatprep.mubr.msk.bf16.mxu1 %vm648_vm0, %v647_v1 }
 0x202   :  { %v260_v42 = vpop.f32.mrb[4].mxu0 }
 0x203   :  { %v476_v43 = vpop.f32.mrb[5].mxu0  ;;  %v307_v44 = vsel %vm306_vm5, %v260_v42, -inf }
 0x204   :  { %v300_v45 = vpop.f32.mrb[4].mxu1  ;;  %308 = vmax.xlane.f32.xlu0 %v307_v44  ;;  %v263_v46 = vpop.f32.mrb[6].mxu0 }
 0x205   :  { %v477_v47 = vpop.f32.mrb[7].mxu0  ;;  %v482_v48 = vpop.f32.mrb[5].mxu1  ;;  %v310_v51 = vsel %vm306_vm5, %v300_v45, -inf }
 0x206   :  { %v303_v49 = vpop.f32.mrb[6].mxu1 }
 0x207   :  { %v483_v50 = vpop.f32.mrb[7].mxu1 }
 0x208   :  { %311 = vmax.xlane.f32.xlu0 %v310_v51 }
 0x291   :  { %v309_v52 = vpop.xlane.xlu0 %308 }
 0x292   :  { %v313_v53 = vsub.f32 %v260_v42, %v309_v52 }
 0x294   :  { %v315_v54 = vmul.f32 1.442695, %v313_v53 }
 0x295   :  { %v312_v55 = vpop.xlane.xlu0 %311 }
 0x296   :  { %512 = vpow2.f32 %v315_v54  ;;  %v314_v56 = vsub.f32 %v300_v45, %v312_v55 }
 0x298   :  { %v317_v57 = vmul.f32 1.442695, %v314_v56 }
 0x29a   :  { %514 = vpow2.f32 %v317_v57 }
 0x2a0   :  { %v513_v58 = vpop.eup %512 }
 0x2a1   :  { %v319_v59 = vsel %vm306_vm5, %v513_v58, 0.0 }
 0x2a2   :  { %320 = vadd.xlane.f32.xlu1 %v319_v59 }
 0x2a4   :  { %v515_v60 = vpop.eup %514 }
 0x2a5   :  { %v322_v61 = vsel %vm306_vm5, %v515_v60, 0.0 }
 0x2a6   :  { %323 = vadd.xlane.f32.xlu1 %v322_v61 }
 0x32f   :  { %v321_v62 = vpop.xlane.xlu1 %320 }
 0x330   :  { %516 = vrcp.f32 %v321_v62 }
 0x333   :  { %v324_v63 = vpop.xlane.xlu1 %323 }
 0x334   :  { %518 = vrcp.f32 %v324_v63 }
 0x33a   :  { %v517_v0 = vpop.eup %516 }
 0x33b   :  { %v327_v1 = vmul.f32 %v517_v0, %v513_v58 }
 0x33d   :  { %v329_v2 = vpack.c.bf16 %v327_v1, %v327_v1 }
 0x33e   :  { %v519_v3 = vpop.eup %518 }
 0x33f   :  { %v328_v4 = vmul.f32 %v519_v3, %v515_v60  ;;  %487 = vmatmul.mubr.msk.bf16.vlgmr.msra.gmra.mrb[8].mxu0 %vm306_vm5, %v329_v2 }
 0x341   :  { %v330_v5 = vpack.c.bf16 %v328_v4, %v328_v4 }
 0x343   :  { %493 = vmatmul.mubr.msk.bf16.vlgmr.msra.gmra.mrb[8].mxu1 %vm306_vm5, %v330_v5 }
 0x412   :  { %v374_v6 = vpop.f32.mrb[8].mxu0 }
 0x413   :  { %426 = vst [vmem:[#allocation10] sm:$0xff] %v374_v6  ;;  %v488_v7 = vpop.f32.mrb[9].mxu0 }
 0x414   :  { %v377_v8 = vpop.f32.mrb[10].mxu0 }
 0x415   :  { %v489_v9 = vpop.f32.mrb[11].mxu0 }
 0x416   :  { %v420_v10 = vpop.f32.mrb[8].mxu1 }
 0x417   :  { %427 = vst [vmem:[#allocation10 + $0x8] sm:$0xff] %v420_v10  ;;  %v494_v11 = vpop.f32.mrb[9].mxu1 }
 0x418   :  { %v423_v12 = vpop.f32.mrb[10].mxu1 }
 0x419   :  { %619 = shalt.err (!%p616_p8)
}
 0x41a   :  { %s620_s30 = scalar_lea.hbm %s797_s6, 256 }
 0x41b   :  { %p621_p9 = scmp.ne.s32.totalorder %s797_s6, %s620_s30  ;;  %p624_p10 = scmp.lt.u32.totalorder %s620_s30, %s797_s6 }
 0x41d   :  { %p626_p11 = pnand %p624_p10, %p621_p9 }
 0x41f   :  { %629 = shalt.err (!%p626_p11)
}
 0x420   :  { %439 = dma.vmem_to_hbm [thread:$0]  %s434_s5, 256, %s797_s6, [#allocation4], %s640_s9, %s640_s9, %s641_s10   ;;  %v495_v13 = vpop.f32.mrb[11].mxu1 }
 0x421   :  { %636 = dma.done.wait [#allocation4], 256  }
 0x422   :  { %637 = vsyncadd [#allocation4], 4294967040 }
 0x423   :  { %443 = vsyncpa [#allocation3], 1 }
 0x424   :  { %444 = vsyncpa [#allocation6], 1 }
 0x425   :  { %445 = vsyncpa [#allocation9], 1 }
 0x426   :  { %446 = vsyncpa [#allocation4], 1 }

</bundles_post_ra>
